<compile_context>
chip_gen: v6e
topology: v6e:2x2x1
jax: 0.10.0
libtpu: 0.0.40
codegen_flags: <defaults>
</compile_context>

<pallas_src>
import jax
import jax.numpy as jnp
from jax.experimental import pallas as pl
from jax.experimental.pallas import tpu as pltpu

LANE = 128
H1, H2, OUT = 25, 32, 4           # logical layer widths from the PyTorch module
H1_PAD, H2_PAD = 128, 128         # lane-dense hidden widths
OUT_PAD = 8                       # sublane-aligned output rows (padded rows are 0)


def _round_up(x, m):
    return (x + m - 1) // m * m


def dqn_kernel(x_ref, w1_ref, b1_ref, w2_ref, b2_ref, w3t_ref, b3_ref, o_ref):
    # x arrives as f32 (no wrapper-side bf16 copy); cast right before the MXU.
    x = x_ref[...].astype(w1_ref.dtype)
    # fc1 + ReLU: bf16 MXU operands, f32 accumulate; bias/ReLU in f32.
    h1 = jnp.dot(x, w1_ref[...], preferred_element_type=jnp.float32)
    h1 = jnp.maximum(h1 + b1_ref[...], 0.0)
    # fc2 + ReLU.
    h2 = jnp.dot(h1.astype(w2_ref.dtype), w2_ref[...],
                 preferred_element_type=jnp.float32)
    h2 = jnp.maximum(h2 + b2_ref[...], 0.0)
    # Output layer, computed transposed for a lane-dense store:
    #   o_t[n, b] = sum_k w3t[n, k] * h2[b, k]   (q@k.T-style contraction)
    o_t = jax.lax.dot_general(
        w3t_ref[...], h2.astype(w3t_ref.dtype),
        dimension_numbers=(((1,), (1,)), ((), ())),
        preferred_element_type=jnp.float32)
    o_ref[...] = o_t + b3_ref[...]


def init_params(key, img_height, img_width):
    """nn.Linear-style init (uniform +/- 1/sqrt(fan_in)); weights stored as
    (in_features, out_features), i.e. PyTorch weight.T, so y = x @ W + b."""
    dims = [(img_height * img_width, H1), (H1, H2), (H2, OUT)]
    params = []
    for fan_in, fan_out in dims:
        key, kw, kb = jax.random.split(key, 3)
        bound = 1.0 / jnp.sqrt(jnp.float32(fan_in))
        w = jax.random.uniform(kw, (fan_in, fan_out), jnp.float32, -bound, bound)
        b = jax.random.uniform(kb, (1, fan_out), jnp.float32, -bound, bound)
        params.extend([w, b])
    return tuple(params)


def prepare_params(params, compute_dtype=jnp.bfloat16):
    """One-time param prep. Only the *output* dims of W1/W2 are padded to 128
    lanes (contraction dims keep logical sizes so x never needs padding).
    W3 is stored transposed (OUT_PAD, H2_PAD) for the lane-dense output store.
    Padded weight rows/cols and bias lanes are exactly 0.0 so ReLU keeps them
    inert and the final (B, 4) slice is exact. Biases stay f32."""
    w1, b1, w2, b2, w3, b3 = params
    in_dim = w1.shape[0]
    cd = compute_dtype
    w1p = jnp.zeros((in_dim, H1_PAD), cd).at[:, :H1].set(w1.astype(cd))
    b1p = jnp.zeros((1, H1_PAD), jnp.float32).at[:, :H1].set(b1)
    w2p = jnp.zeros((H1_PAD, H2_PAD), cd).at[:H1, :H2].set(w2.astype(cd))
    b2p = jnp.zeros((1, H2_PAD), jnp.float32).at[:, :H2].set(b2)
    w3t = jnp.zeros((OUT_PAD, H2_PAD), cd).at[:OUT, :H2].set(w3.T.astype(cd))
    b3p = jnp.zeros((OUT_PAD, 1), jnp.float32).at[:OUT, :].set(b3.reshape(OUT, 1))
    return (w1p, b1p, w2p, b2p, w3t, b3p)


def _choose_tile(B, tb_max, in_dim):
    """Pick (tb, b_pad). Small batches: one tile. Larger batches: tb is a
    multiple of 128 (keeps the transposed (OUT_PAD, tb) output block legal and
    lane-dense) and >= 2 tiles so v7x's two TensorCores both get work, capped
    so the double-buffered f32 x tile stays under ~16 MiB of VMEM."""
    b8 = _round_up(B, 8)
    if b8 <= 256:
        return b8, b8
    vmem_rows = (16 << 20) // (2 * 4 * in_dim)          # 2 buffers x 4 B/elem
    tb_cap = max(128, (vmem_rows // 128) * 128)
    tb = min(tb_max, tb_cap, _round_up(-(-B // 2), 128))
    b_pad = _round_up(B, tb)
    return tb, b_pad


def dqn_forward(x, prep_params, *, tb_max=1024):
    """x: (B, H, W) float32. prep_params: output of prepare_params.
    Returns (B, 4) float32."""
    w1, b1, w2, b2, w3t, b3 = prep_params
    B = x.shape[0]
    x_flat = x.reshape(B, -1)                 # flatten(start_dim=1); stays f32
    in_dim = x_flat.shape[1]
    assert w1.shape[0] == in_dim, "prepared params don't match input size"

    tb, b_pad = _choose_tile(B, tb_max, in_dim)
    if b_pad != B:
        x_flat = jnp.pad(x_flat, ((0, b_pad - B), (0, 0)))
    grid = (b_pad // tb,)

    w_bytes = 2 * (w1.size + w2.size + w3t.size) + 4 * (b1.size + b2.size + b3.size)
    cost = pl.CostEstimate(
        flops=2 * b_pad * (in_dim * H1_PAD + H1_PAD * H2_PAD + H2_PAD * OUT_PAD),
        transcendentals=0,
        bytes_accessed=b_pad * in_dim * 4 + w_bytes + OUT_PAD * b_pad * 4,
    )

    out_t = pl.pallas_call(
        dqn_kernel,
        out_shape=jax.ShapeDtypeStruct((OUT_PAD, b_pad), jnp.float32),
        grid=grid,
        in_specs=[
            pl.BlockSpec((tb, in_dim), lambda i: (i, 0)),        # x (f32), batch-tiled
            pl.BlockSpec((in_dim, H1_PAD), lambda i: (0, 0)),    # resident weights/biases
            pl.BlockSpec((1, H1_PAD), lambda i: (0, 0)),
            pl.BlockSpec((H1_PAD, H2_PAD), lambda i: (0, 0)),
            pl.BlockSpec((1, H2_PAD), lambda i: (0, 0)),
            pl.BlockSpec((OUT_PAD, H2_PAD), lambda i: (0, 0)),
            pl.BlockSpec((OUT_PAD, 1), lambda i: (0, 0)),
        ],
        out_specs=pl.BlockSpec((OUT_PAD, tb), lambda i: (0, i)), # lane-dense store
        compiler_params=pltpu.CompilerParams(
            dimension_semantics=("parallel",),  # v7x: shard batch tiles across 2 TCs
        ),
        cost_estimate=cost,
    )(x_flat, w1, b1, w2, b2, w3t, b3)

    # Tiny wrapper-side transpose + slice: (OUT_PAD, b_pad) -> (B, 4).
    return out_t.T[:B, :OUT]


def dqn_reference(x, params, compute_dtype=jnp.float32):
    """Plain-JAX reference; compute_dtype mimics the kernel's MXU operand
    quantization (f32 accumulation either way)."""
    w1, b1, w2, b2, w3, b3 = params
    cd = compute_dtype
    t = x.reshape(x.shape[0], -1)
    h1 = jnp.maximum(jnp.dot(t.astype(cd), w1.astype(cd),
                             preferred_element_type=jnp.float32) + b1, 0.0)
    h2 = jnp.maximum(jnp.dot(h1.astype(cd), w2.astype(cd),
                             preferred_element_type=jnp.float32) + b2, 0.0)
    return jnp.dot(h2.astype(cd), w3.astype(cd),
                   preferred_element_type=jnp.float32) + b3


if __name__ == "__main__":
    key = jax.random.PRNGKey(0)
    img_height, img_width = 16, 16
    batch = 2

    key, kx = jax.random.split(key)
    x = jax.random.normal(kx, (batch, img_height, img_width), jnp.float32)
    params = init_params(key, img_height, img_width)
    prep = prepare_params(params, compute_dtype=jnp.bfloat16)

    out = dqn_forward(x, prep)
    jax.block_until_ready(out)
    assert out.shape == (batch, 4)

    # Same-quantization reference (bf16 operands, f32 accumulation).
    ref_bf16 = dqn_reference(x, params, compute_dtype=jnp.bfloat16)
    assert jnp.allclose(out, ref_bf16, atol=2e-3, rtol=2e-3)

    # Loose sanity check against the pure-f32 PyTorch-equivalent math.
    ref_f32 = dqn_reference(x, params, compute_dtype=jnp.float32)
    assert jnp.allclose(out, ref_f32, atol=5e-2, rtol=5e-2)

    print("KERNEL_OK")
</pallas_src>

<mosaic_0001>
module attributes {stable_mosaic.version = 11 : i64} {
  func.func @dqn_kernel(%arg0: i32, %arg1: memref<8x256xf32, #tpu.memory_space<vmem>>, %arg2: memref<256x128xbf16, #tpu.memory_space<vmem>>, %arg3: memref<1x128xf32, #tpu.memory_space<vmem>>, %arg4: memref<128x128xbf16, #tpu.memory_space<vmem>>, %arg5: memref<1x128xf32, #tpu.memory_space<vmem>>, %arg6: memref<8x128xbf16, #tpu.memory_space<vmem>>, %arg7: memref<8x1xf32, #tpu.memory_space<vmem>>, %arg8: memref<8x8xf32, #tpu.memory_space<vmem>>) attributes {dimension_semantics = [#tpu.dimension_semantics<parallel>], iteration_bounds = array<i64: 1>, scalar_prefetch = 0 : i64, scratch_operands = 0 : i64, tpu.core_type = #tpu.core_type<tc>, window_params = [{transform_indices = @transform_0, window_bounds = array<i64: 8, 256>}, {pipeline_mode = #tpu.pipeline_mode<synchronous>, transform_indices = @transform_1, window_bounds = array<i64: 256, 128>}, {pipeline_mode = #tpu.pipeline_mode<synchronous>, transform_indices = @transform_2, window_bounds = array<i64: 1, 128>}, {pipeline_mode = #tpu.pipeline_mode<synchronous>, transform_indices = @transform_3, window_bounds = array<i64: 128, 128>}, {pipeline_mode = #tpu.pipeline_mode<synchronous>, transform_indices = @transform_4, window_bounds = array<i64: 1, 128>}, {pipeline_mode = #tpu.pipeline_mode<synchronous>, transform_indices = @transform_5, window_bounds = array<i64: 8, 128>}, {pipeline_mode = #tpu.pipeline_mode<synchronous>, transform_indices = @transform_6, window_bounds = array<i64: 8, 1>}, {transform_indices = @transform_7, window_bounds = array<i64: 8, 8>}]} {
    %c0 = arith.constant 0 : index
    %c0_0 = arith.constant 0 : index
    %0 = vector.load %arg1[%c0, %c0_0] : memref<8x256xf32, #tpu.memory_space<vmem>>, vector<8x256xf32>
    %1 = arith.truncf %0 : vector<8x256xf32> to vector<8x256xbf16>
    %c0_1 = arith.constant 0 : index
    %c0_2 = arith.constant 0 : index
    %2 = vector.load %arg2[%c0_1, %c0_2] : memref<256x128xbf16, #tpu.memory_space<vmem>>, vector<256x128xbf16>
    %cst = arith.constant dense<0.000000e+00> : vector<8x128xf32>
    %3 = tpu.matmul %1, %2, %cst {dimension_numbers = #tpu.dot_dimension_numbers<[1], [0], [0], [1], [0, 0, 1, 1], [], []>} : vector<8x256xbf16>, vector<256x128xbf16>, vector<8x128xf32> -> vector<8x128xf32>
    %c0_3 = arith.constant 0 : index
    %c0_4 = arith.constant 0 : index
    %4 = vector.load %arg3[%c0_3, %c0_4] : memref<1x128xf32, #tpu.memory_space<vmem>>, vector<1x128xf32>
    %5 = vector.broadcast %4 : vector<1x128xf32> to vector<8x128xf32>
    %6 = arith.addf %3, %5 : vector<8x128xf32>
    %cst_5 = arith.constant 0.000000e+00 : f32
    %7 = vector.broadcast %cst_5 : f32 to vector<8x128xf32>
    %8 = arith.maximumf %6, %7 : vector<8x128xf32>
    %9 = arith.truncf %8 : vector<8x128xf32> to vector<8x128xbf16>
    %c0_6 = arith.constant 0 : index
    %c0_7 = arith.constant 0 : index
    %10 = vector.load %arg4[%c0_6, %c0_7] : memref<128x128xbf16, #tpu.memory_space<vmem>>, vector<128x128xbf16>
    %cst_8 = arith.constant dense<0.000000e+00> : vector<8x128xf32>
    %11 = tpu.matmul %9, %10, %cst_8 {dimension_numbers = #tpu.dot_dimension_numbers<[1], [0], [0], [1], [0, 0, 1, 1], [], []>} : vector<8x128xbf16>, vector<128x128xbf16>, vector<8x128xf32> -> vector<8x128xf32>
    %c0_9 = arith.constant 0 : index
    %c0_10 = arith.constant 0 : index
    %12 = vector.load %arg5[%c0_9, %c0_10] : memref<1x128xf32, #tpu.memory_space<vmem>>, vector<1x128xf32>
    %13 = vector.broadcast %12 : vector<1x128xf32> to vector<8x128xf32>
    %14 = arith.addf %11, %13 : vector<8x128xf32>
    %cst_11 = arith.constant 0.000000e+00 : f32
    %15 = vector.broadcast %cst_11 : f32 to vector<8x128xf32>
    %16 = arith.maximumf %14, %15 : vector<8x128xf32>
    %c0_12 = arith.constant 0 : index
    %c0_13 = arith.constant 0 : index
    %17 = vector.load %arg6[%c0_12, %c0_13] : memref<8x128xbf16, #tpu.memory_space<vmem>>, vector<8x128xbf16>
    %18 = arith.truncf %16 : vector<8x128xf32> to vector<8x128xbf16>
    %cst_14 = arith.constant dense<0.000000e+00> : vector<8x8xf32>
    %19 = tpu.matmul %17, %18, %cst_14 {dimension_numbers = #tpu.dot_dimension_numbers<[1], [1], [0], [0], [0, 0, 1, 0], [], []>} : vector<8x128xbf16>, vector<8x128xbf16>, vector<8x8xf32> -> vector<8x8xf32>
    %c0_15 = arith.constant 0 : index
    %c0_16 = arith.constant 0 : index
    %20 = vector.load %arg7[%c0_15, %c0_16] : memref<8x1xf32, #tpu.memory_space<vmem>>, vector<8x1xf32>
    %21 = vector.broadcast %20 : vector<8x1xf32> to vector<8x8xf32>
    %22 = arith.addf %19, %21 : vector<8x8xf32>
    %c0_17 = arith.constant 0 : index
    %c0_18 = arith.constant 0 : index
    %23 = vector.load %arg8[%c0_17, %c0_18] : memref<8x8xf32, #tpu.memory_space<vmem>>, vector<8x8xf32>
    tpu.vector_store %arg8[%c0_17, %c0_18], %22 {strides = array<i32>} : memref<8x8xf32, #tpu.memory_space<vmem>>, vector<8x8xf32>,
    return
  }
  func.func @transform_0(%arg0: i32) -> (i32, i32) {
    %c0_i32 = arith.constant 0 : i32
    %c0_i32_0 = arith.constant 0 : i32
    return %arg0, %c0_i32 : i32, i32
  }
  func.func @transform_1(%arg0: i32) -> (i32, i32) {
    %c0_i32 = arith.constant 0 : i32
    %c0_i32_0 = arith.constant 0 : i32
    %c0_i32_1 = arith.constant 0 : i32
    return %c0_i32, %c0_i32_0 : i32, i32
  }
  func.func @transform_2(%arg0: i32) -> (i32, i32) {
    %c0_i32 = arith.constant 0 : i32
    %c0_i32_0 = arith.constant 0 : i32
    %c0_i32_1 = arith.constant 0 : i32
    return %c0_i32, %c0_i32_0 : i32, i32
  }
  func.func @transform_3(%arg0: i32) -> (i32, i32) {
    %c0_i32 = arith.constant 0 : i32
    %c0_i32_0 = arith.constant 0 : i32
    %c0_i32_1 = arith.constant 0 : i32
    return %c0_i32, %c0_i32_0 : i32, i32
  }
  func.func @transform_4(%arg0: i32) -> (i32, i32) {
    %c0_i32 = arith.constant 0 : i32
    %c0_i32_0 = arith.constant 0 : i32
    %c0_i32_1 = arith.constant 0 : i32
    return %c0_i32, %c0_i32_0 : i32, i32
  }
  func.func @transform_5(%arg0: i32) -> (i32, i32) {
    %c0_i32 = arith.constant 0 : i32
    %c0_i32_0 = arith.constant 0 : i32
    %c0_i32_1 = arith.constant 0 : i32
    return %c0_i32, %c0_i32_0 : i32, i32
  }
  func.func @transform_6(%arg0: i32) -> (i32, i32) {
    %c0_i32 = arith.constant 0 : i32
    %c0_i32_0 = arith.constant 0 : i32
    %c0_i32_1 = arith.constant 0 : i32
    return %c0_i32, %c0_i32_0 : i32, i32
  }
  func.func @transform_7(%arg0: i32) -> (i32, i32) {
    %c0_i32 = arith.constant 0 : i32
    %c0_i32_0 = arith.constant 0 : i32
    return %c0_i32, %arg0 : i32, i32
  }
}

</mosaic_0001>

<bundles_post_ra>
// kernel: tpu_custom_call.1
= control target key start
LH: loop header
LB: loop body
LE: loop exit
PB: predicated region body
PF: predicated region fallthrough
CT: control target
= control target key end

     0   :  { %12 = vsyncpa [#allocation3], 0  ;;  %s715_s0 = inlined_call_operand.hbm [shape: f32[8,256], index: 0, kind: input, shape index: {}]   ;;  %s716_s1 = inlined_call_operand.hbm [shape: bf16[256,128], index: 1, kind: input, shape index: {}]   ;;  %s717_s2 = inlined_call_operand.vmem [shape: f32[1,128], index: 2, kind: input, shape index: {}]   ;;  %s718_s3 = inlined_call_operand.hbm [shape: bf16[128,128], index: 3, kind: input, shape index: {}]   ;;  %s719_s4 = inlined_call_operand.vmem [shape: f32[1,128], index: 4, kind: input, shape index: {}]   ;;  %s720_s5 = inlined_call_operand.vmem [shape: bf16[8,128], index: 5, kind: input, shape index: {}]   ;;  %s721_s6 = inlined_call_operand.vmem [shape: f32[8,1], index: 6, kind: input, shape index: {}]   ;;  %s722_s7 = inlined_call_operand.hbm [shape: f32[8,8], index: 7, kind: output, shape index: {}]  }
   0x1   :  { %13 = vsyncpa [#allocation6], 0 }
   0x2   :  { %14 = vsyncpa [#allocation4], 0  ;;  %s631_s24 = smov [#allocation5]  }
   0x3   :  { %s30_s25 = sshll.u32 %s631_s24, 4  ;;  %s31_s25 = int_to_ptr.vmem [resolvable:$true] %s30_s25 }
   0x4   :  { %s553_s26 = scalar_lea.vmem %s31_s25, 2048  ;;  %p558_p1 = scmp.lt.s32.totalorder %s31_s25, %s31_s25 }
   0x5   :  { %p554_p0 = scmp.ne.s32.totalorder %s31_s25, %s553_s26  ;;  %p559_p2 = scmp.lt.s32.totalorder %s553_s26, %s553_s26 }
   0x7   :  { %p560_p3 = por %p559_p2, %p558_p1 }
   0x9   :  { %p561_p4 = pnand %p560_p3, %p554_p0 }
   0xb   :  { %564 = shalt.err (!%p561_p4)
}
   0xc   :  { %s632_s27 = smov 64   ;;  %s633_s28 = smov 4  }
   0xd   :  { %36 = dma.hbm_to_vmem [thread:$0]  %s716_s1, 2048, %s31_s25, [#allocation6], %s632_s27, %s632_s27, %s633_s28  }
   0xe   :  { %s634_s8 = smov [#allocation2]   ;;  %s635_s10 = smov [#allocation7]  }
   0xf   :  { %s21_s9 = sshll.u32 %s634_s8, 4  ;;  %s44_s11 = sshll.u32 %s635_s10, 4  ;;  %s22_s9 = int_to_ptr.vmem [resolvable:$true] %s21_s9  ;;  %s45_s11 = int_to_ptr.vmem [resolvable:$true] %s44_s11 }
  0x10   :  { %s573_s12 = scalar_lea.vmem %s22_s9, 256  ;;  %p578_p6 = scmp.lt.s32.totalorder %s22_s9, %s22_s9 }
  0x11   :  { %p574_p5 = scmp.ne.s32.totalorder %s22_s9, %s573_s12  ;;  %p579_p7 = scmp.lt.s32.totalorder %s573_s12, %s573_s12 }
  0x13   :  { %p580_p8 = por %p579_p7, %p578_p6 }
  0x15   :  { %p581_p9 = pnand %p580_p8, %p574_p5 }
  0x17   :  { %584 = shalt.err (!%p581_p9)
}
  0x18   :  { %24 = dma.hbm_to_vmem [thread:$0]  %s715_s0, 256, %s22_s9, [#allocation3]  }
  0x19   :  { %s593_s15 = scalar_lea.vmem %s45_s11, 1024  ;;  %p598_p11 = scmp.lt.s32.totalorder %s45_s11, %s45_s11 }
  0x1a   :  { %p594_p10 = scmp.ne.s32.totalorder %s45_s11, %s593_s15  ;;  %p599_p12 = scmp.lt.s32.totalorder %s593_s15, %s593_s15 }
  0x1c   :  { %p600_p13 = por %p599_p12, %p598_p11 }
  0x1e   :  { %p601_p0 = pnand %p600_p13, %p594_p10 }
  0x20   :  { %604 = shalt.err (!%p601_p0)
}
  0x21   :  { %50 = dma.hbm_to_vmem [thread:$0]  %s718_s3, 1024, %s45_s11, [#allocation6], %s632_s27, %s632_s27, %s633_s28  }
  0x22   :  { %625 = dma.done.wait [#allocation3], 256  }
  0x23   :  { %626 = vsyncadd [#allocation3], 4294967040 }
  0x24   :  { %627 = dma.done.wait [#allocation6], 3072  }
  0x25   :  { %628 = vsyncadd [#allocation6], 4294964224  ;;  %v636_v0 = vmov 0.0   ;;  %v521_v1 = vld [vmem:[#allocation5 + $0x78] sm:$0xff]   ;;  %v523_v3 = vld [vmem:[#allocation5 + $0x70] sm:$0xff]   ;;  %vm637_vm0 = vmmov 0  }
  0x26   :  { %485 = vmatprep.subr.bf16.mxu1 %v636_v0  ;;  %v522_v2 = vld [vmem:[#allocation5 + $0x38] sm:$0xff]   ;;  %452 = vmatprep.subr.bf16.mxu0 %v521_v1  ;;  %v524_v4 = vld [vmem:[#allocation5 + $0x30] sm:$0xff]   ;;  %v525_v5 = vld [vmem:[#allocation5 + $0x68] sm:$0xff]   ;;  %v638_v39 = vmov 0   ;;  %vm408_vm1 = vcmask 64512  }
  0x27   :  { %453 = vmatpush3.bf16.msra.mxu0 %v522_v2  ;;  %v526_v6 = vld [vmem:[#allocation5 + $0x28] sm:$0xff]   ;;  %v527_v7 = vld [vmem:[#allocation5 + $0x60] sm:$0xff]   ;;  %v529_v9 = vld [vmem:[#allocation5 + $0x58] sm:$0xff]   ;;  %501 = vmatprep.mubr.msk.bf16.mxu1 %vm637_vm0, %v636_v0 }
  0x28   :  { %454 = vmatprep.subr.bf16.mxu0 %v523_v3  ;;  %v528_v8 = vld [vmem:[#allocation5 + $0x20] sm:$0xff]   ;;  %v530_v10 = vld [vmem:[#allocation5 + $0x18] sm:$0xff]   ;;  %v531_v11 = vld [vmem:[#allocation5 + $0x50] sm:$0xff]   ;;  %520 = vset.pattern.permute.xlu0 %v638_v39 }
  0x29   :  { %v68_v12 = vld [vmem:[#allocation2 + $0x8] sm:$0xff]  ;;  %v532_v15 = vld [vmem:[#allocation5 + $0x10] sm:$0xff]   ;;  %v533_v16 = vld [vmem:[#allocation5 + $0x48] sm:$0xff]  }
  0x2a   :  { %v70_v13 = vpack.c.bf16 %v68_v12, %v68_v12  ;;  %v537_v14 = vld [vmem:[#allocation7 + $0x38] sm:$0xff]   ;;  %v538_v17 = vld [vmem:[#allocation7 + $0x30] sm:$0xff]   ;;  %v534_v18 = vld [vmem:[#allocation5 + $0x8] sm:$0xff]  }
  0x2b   :  { %455 = vmatpush3.bf16.msra.mxu0 %v524_v4  ;;  %486 = vmatpush3.bf16.msra.mxu1 %v537_v14  ;;  %v535_v19 = vld [vmem:[#allocation5 + $0x40] sm:$0xff]   ;;  %v539_v20 = vld [vmem:[#allocation7 + $0x28] sm:$0xff]   ;;  %v67_v22 = vld [vmem:[#allocation2] sm:$0xff] }
  0x2c   :  { %456 = vmatprep.subr.bf16.mxu0 %v525_v5  ;;  %238 = vmatprep.mubr.bf16.mxu0 %v70_v13  ;;  %v536_v21 = vld [vmem:[#allocation5] sm:$0xff]   ;;  %v69_v24 = vpack.c.bf16 %v67_v22, %v67_v22  ;;  %v541_v25 = vld [vmem:[#allocation7 + $0x18] sm:$0xff]   ;;  %v542_v26 = vld [vmem:[#allocation7 + $0x10] sm:$0xff]  }
  0x2d   :  { %487 = vmatprep.subr.bf16.mxu1 %v636_v0  ;;  %v540_v23 = vld [vmem:[#allocation7 + $0x20] sm:$0xff]   ;;  %v543_v27 = vld [vmem:[#allocation7 + $0x8] sm:$0xff]   ;;  %v426_v30 = vld [vmem:[%s717_s2] ss:$0 sm:$0xff] }
  0x2e   :  { %v544_v28 = vld [vmem:[#allocation7] sm:$0xff]   ;;  %v362_v38 = vld [vmem:[%s721_s6] sm:$0xff]  ;;  %s639_s6 = smov [#allocation8]  }
  0x2f   :  { %457 = vmatpush3.bf16.msra.mxu0 %v526_v6  ;;  %488 = vmatpush3.bf16.msra.mxu1 %v538_v17  ;;  %v443_v40 = vld [vmem:[%s719_s4] ss:$0 sm:$0xff]  ;;  %s416_s22 = sshll.u32 %s639_s6, 4  ;;  %s417_s22 = int_to_ptr.vmem [resolvable:$true] %s416_s22 }
  0x30   :  { %458 = vmatprep.subr.bf16.mxu0 %v527_v7  ;;  %489 = vmatprep.subr.bf16.mxu1 %v636_v0  ;;  %v360_v48 = vld [vmem:[%s720_s5] sm:$0xf]  ;;  %s605_s4 = scalar_lea.vmem %s417_s22, 128  ;;  %p610_p2 = scmp.lt.s32.totalorder %s417_s22, %s417_s22 }
  0x31   :  { %365 = vperm.xlu0 %520, %v362_v38   ;;  %p606_p1 = scmp.ne.s32.totalorder %s417_s22, %s605_s4  ;;  %p611_p3 = scmp.lt.s32.totalorder %s605_s4, %s605_s4 }
  0x33   :  { %459 = vmatpush3.bf16.msra.mxu0 %v528_v8  ;;  %490 = vmatpush3.bf16.msra.mxu1 %v539_v20  ;;  %p612_p4 = por %p611_p3, %p610_p2 }
  0x34   :  { %460 = vmatprep.subr.bf16.mxu0 %v529_v9  ;;  %491 = vmatprep.subr.bf16.mxu1 %v636_v0 }
  0x35   :  { %p613_p5 = pnand %p612_p4, %p606_p1 }
  0x37   :  { %461 = vmatpush3.bf16.msra.mxu0 %v530_v10  ;;  %492 = vmatpush3.bf16.msra.mxu1 %v540_v23 }
  0x38   :  { %462 = vmatprep.subr.bf16.mxu0 %v531_v11  ;;  %493 = vmatprep.subr.bf16.mxu1 %v636_v0 }
  0x3b   :  { %463 = vmatpush3.bf16.msra.mxu0 %v532_v15  ;;  %494 = vmatpush3.bf16.msra.mxu1 %v541_v25 }
  0x3c   :  { %464 = vmatprep.subr.bf16.mxu0 %v533_v16  ;;  %495 = vmatprep.subr.bf16.mxu1 %v636_v0 }
  0x3f   :  { %465 = vmatpush3.bf16.msra.mxu0 %v534_v18  ;;  %496 = vmatpush3.bf16.msra.mxu1 %v542_v26 }
  0x40   :  { %466 = vmatprep.subr.bf16.mxu0 %v535_v19  ;;  %497 = vmatprep.subr.bf16.mxu1 %v636_v0 }
  0x43   :  { %467 = vmatpush3.bf16.msra.mxu0 %v536_v21  ;;  %498 = vmatpush3.bf16.msra.mxu1 %v543_v27 }
  0x44   :  { %505 = vmatprep.subr.bf16.mxu0 %v636_v0  ;;  %499 = vmatprep.subr.bf16.mxu1 %v636_v0 }
  0x46   :  { %239 = vmatmul.mubr.bf16.vlgmr.msra.gmra.mxu0 %v69_v24 }
  0x47   :  { %500 = vmatpush3.bf16.msra.mxu1 %v544_v28  ;;  %507 = vmatprep.mubr.msk.bf16.mxu0 %vm637_vm0, %v636_v0 }
  0xac   :  { %v366_v49 = vpop.permute.xlu0 %365 }
 0x106   :  { %v468_v29 = vpop.f32.mrf.mxu0 }
 0x108   :  { %v469_v31 = vpop.f32.mrf.mxu0 }
 0x109   :  { %v470_v32 = vadd.f32 %v469_v31, %v468_v29 }
 0x10a   :  { %v471_v33 = vpop.f32.mrf.mxu0 }
 0x10b   :  { %v241_v34 = vadd.f32 %v470_v32, %v426_v30 }
 0x10c   :  { %v472_v35 = vpop.f32.mrf.mxu0 }
 0x10d   :  { %v246_v36 = vmax.f32 %v241_v34, 0.0 }
 0x10f   :  { %v247_v37 = vpack.c.bf16 %v246_v36, %v246_v36 }
 0x111   :  { %502 = vmatmul.mubr.bf16.vlgmr.msra.gmra.mxu1 %v247_v37 }
 0x1d1   :  { %v353_v41 = vpop.f32.mrf.mxu1 }
 0x1d2   :  { %v354_v42 = vadd.f32 %v443_v40, %v353_v41 }
 0x1d3   :  { %v503_v43 = vpop.f32.mrf.mxu1 }
 0x1d4   :  { %v359_v44 = vmax.f32 %v354_v42, 0.0 }
 0x1d5   :  { %v356_v45 = vpop.f32.mrf.mxu1 }
 0x1d6   :  { %v361_v46 = vpack.c.bf16 %v359_v44, %v359_v44 }
 0x1d7   :  { %v504_v47 = vpop.f32.mrf.mxu1 }
 0x1d8   :  { %506 = vmatpush3.bf16.xpose.msra.mxu0 %v361_v46 }
 0x1df   :  { %508 = vmatmul.mubr.bf16.vlgmr.msra.gmra.mxu0 %v360_v48 }
 0x29f   :  { %v402_v50 = vpop.f32.mrf.mxu0 }
 0x2a0   :  { %v403_v51 = vadd.f32 %v402_v50, %v366_v49 }
 0x2a1   :  { %v509_v52 = vpop.f32.mrf.mxu0 }
 0x2a2   :  { %409 = vst.msk [vmem:[#allocation8] sm:$0xff] %vm408_vm1, %v403_v51 }
 0x2a3   :  { %v405_v53 = vpop.f32.mrf.mxu0 }
 0x2a4   :  { %616 = shalt.err (!%p613_p5)
}
 0x2a5   :  { %419 = dma.vmem_to_hbm [thread:$0]  %s417_s22, 128, %s722_s7, [#allocation4]   ;;  %v510_v54 = vpop.f32.mrf.mxu0 }
 0x2a6   :  { %629 = dma.done.wait [#allocation4], 128  }
 0x2a7   :  { %630 = vsyncadd [#allocation4], 4294967168 }
 0x2a8   :  { %423 = vsyncpa [#allocation3], 1 }
 0x2a9   :  { %424 = vsyncpa [#allocation6], 1 }
 0x2aa   :  { %425 = vsyncpa [#allocation4], 1 }

</bundles_post_ra>
